<compile_context>
chip_gen: v6e
topology: v6e:2x2x1
jax: 0.10.0
libtpu: 0.0.40
codegen_flags: <defaults>
</compile_context>

<pallas_src>
import jax
import jax.numpy as jnp
import numpy as np
from jax import lax
from jax.experimental import pallas as pl
from jax.experimental.pallas import tpu as pltpu

KSZ = 7   # conv kernel size
PAD = 3   # conv padding


def spatial_attention_kernel(x_ref, w1c_ref, b1_ref, mw_ref, tw_ref,
                             w2c_ref, b2_ref, out_ref, xpad_ref, ppad_ref):
    # x_ref   : (Bb, H, W*Cin)        unpadded lane-dense input slab (Bb batch elems)
    # w1c_ref : (K*W*Cin, W*Cmid)     conv1: taps K-concatenated, width folded, BN folded
    # b1_ref  : (1, W*Cmid)           conv1 bias tiled over W (BN folded)
    # mw_ref  : (W*Cmid, Cmid)        mean-over-W matrix
    # tw_ref  : (Cmid, W*Cmid)        tile-back-over-W matrix
    # w2c_ref : (K*W*Cmid, W*Cout)    conv2: taps K-concatenated, width folded, BN folded
    # b2_ref  : (1, W*Cout)           conv2 bias tiled over W (BN folded)
    # out_ref : (Bb, H, W*Cout)       lane-dense output slab
    # xpad_ref: (Bb, H+6, W*Cin)      VMEM scratch: height-zero-padded conv1 input
    # ppad_ref: (Bb, H+6, W*Cmid)     VMEM scratch: height-zero-padded conv2 input
    Bb, H, WCin = x_ref.shape
    WCmid = b1_ref.shape[1]
    WCout = out_ref.shape[2]

    # Height zero-padding done in VMEM (zeroed each step: megacore-safe, tiny cost).
    xpad_ref[...] = jnp.zeros_like(xpad_ref)
    xpad_ref[:, PAD:PAD + H, :] = x_ref[...]

    # ---- conv1 (7x7, pad 3) as ONE deep-K matmul: M=Bb*H, K=7*W*Cin -----------
    x1 = jnp.concatenate(
        [xpad_ref[:, kh:kh + H, :] for kh in range(KSZ)], axis=-1)
    x1 = x1.reshape(Bb * H, KSZ * WCin)
    y1 = jnp.dot(x1, w1c_ref[...], preferred_element_type=jnp.float32)
    y1 = jnp.maximum(y1 + b1_ref[...], 0.0)            # folded BN + ReLU, (Bb*H, W*Cmid)

    # ---- adaptive average pools + per-channel rank-1 (outer) product ----------
    y1_3d = y1.reshape(Bb, H, WCmid)
    xw = jnp.mean(y1_3d, axis=1, keepdims=True)        # pool over H -> (Bb, 1, W*Cmid)
    xh = jnp.dot(y1, mw_ref[...], preferred_element_type=jnp.float32)    # (Bb*H, Cmid)
    xh_t = jnp.dot(xh, tw_ref[...], preferred_element_type=jnp.float32)  # (Bb*H, W*Cmid)
    p = xh_t.reshape(Bb, H, WCmid) * xw                 # (Bb, H, W*Cmid)

    ppad_ref[...] = jnp.zeros_like(ppad_ref)
    ppad_ref[:, PAD:PAD + H, :] = p

    # ---- conv2 (7x7, pad 3) as ONE deep-K matmul: K=7*W*Cmid, lane-dense N ----
    x2 = jnp.concatenate(
        [ppad_ref[:, kh:kh + H, :] for kh in range(KSZ)], axis=-1)
    x2 = x2.reshape(Bb * H, KSZ * WCmid)
    y2 = jnp.dot(x2, w2c_ref[...], preferred_element_type=jnp.float32)
    y2 = jax.nn.sigmoid(y2 + b2_ref[...])
    out_ref[...] = y2.reshape(Bb, H, WCout).astype(out_ref.dtype)


def conv_toeplitz_cat(w, width):
    """K-concatenated, width-folded conv weights.

    Returns Wcat of shape (KSZ*width*Ci, width*Co) with
      Wcat[kh*width*Ci + j*Ci + ci, wo*Co + co] = w[kh, j - wo + PAD, ci, co]
    and zero where the width tap falls outside [0, KSZ) (i.e. the conv's width
    zero-padding is folded into the weights).  It pairs with an input built by
    concatenating the 7 height-shifted slices along lanes, so each conv becomes a
    single matmul of contraction depth KSZ*width*Ci.
    """
    w_np = np.asarray(w, np.float32)
    kh_n, kw_n, ci, co = w_np.shape
    t = np.zeros((kh_n, width * ci, width * co), np.float32)
    for wo in range(width):
        for kw in range(kw_n):
            j = wo + kw - PAD
            if 0 <= j < width:
                t[:, j * ci:(j + 1) * ci, wo * co:(wo + 1) * co] = w_np[:, kw]
    return jnp.asarray(t.reshape(kh_n * width * ci, width * co))


def _pick_batch_block(B, H):
    """Batch elements folded into one grid step.

    Targets a matmul M dimension (Bb*H) of up to 256 rows (v6e/v7x MXU); keeps
    >= 2 grid steps (v7x megacore) only when that still leaves Bb*H >= 128.
    """
    divs = [d for d in range(1, B + 1) if B % d == 0 and d * H <= 256]
    if not divs:
        return 1
    bb = max(divs)
    two_step = [d for d in divs if B // d >= 2 and d * H >= 128]
    if two_step:
        bb = max(two_step)
    return bb


def spatial_attention(x_nchw, w1, b1, w2, b2):
    """x_nchw: (B, Cin, H, W) float32. Weights are HWIO with BN already folded."""
    B, Cin, H, W = x_nchw.shape
    Cmid, Cout = w1.shape[3], w2.shape[3]
    Hp = H + 2 * PAD

    # glue: NCHW -> NHWC, flatten (W, C) into a lane-dense axis.  No HBM pad pass:
    # width padding lives in the folded weights, height padding in VMEM scratch.
    x_flat = jnp.transpose(x_nchw, (0, 2, 3, 1)).reshape(B, H, W * Cin)

    # K-concatenated width-folded weights / lane-tiled biases / factored pool mats.
    w1cat = conv_toeplitz_cat(w1, W)                       # (7*W*Cin,  W*Cmid)
    w2cat = conv_toeplitz_cat(w2, W)                       # (7*W*Cmid, W*Cout)
    b1row = jnp.tile(jnp.asarray(b1), W).reshape(1, W * Cmid)
    b2row = jnp.tile(jnp.asarray(b2), W).reshape(1, W * Cout)
    mean_w = jnp.asarray(np.tile(np.eye(Cmid, dtype=np.float32) / W, (W, 1)))
    tile_w = jnp.asarray(np.tile(np.eye(Cmid, dtype=np.float32), (1, W)))

    Bb = _pick_batch_block(B, H)
    grid = (B // Bb,)

    # Grid-invariant operands: whole-array VMEM refs (single-resident, no
    # per-step double-buffered blocks).
    vmem_full = pl.BlockSpec(memory_space=pltpu.MemorySpace.VMEM)

    out_flat = pl.pallas_call(
        spatial_attention_kernel,
        out_shape=jax.ShapeDtypeStruct((B, H, W * Cout), jnp.float32),
        grid_spec=pltpu.PrefetchScalarGridSpec(
            num_scalar_prefetch=0,
            grid=grid,
            in_specs=[
                pl.BlockSpec((Bb, H, W * Cin), lambda b: (b, 0, 0)),
                vmem_full,   # w1cat
                vmem_full,   # b1row
                vmem_full,   # mean_w
                vmem_full,   # tile_w
                vmem_full,   # w2cat
                vmem_full,   # b2row
            ],
            out_specs=pl.BlockSpec((Bb, H, W * Cout), lambda b: (b, 0, 0)),
            scratch_shapes=[
                pltpu.VMEM((Bb, Hp, W * Cin), jnp.float32),
                pltpu.VMEM((Bb, Hp, W * Cmid), jnp.float32),
            ],
        ),
        compiler_params=pltpu.CompilerParams(dimension_semantics=("parallel",)),
    )(x_flat, w1cat, b1row, mean_w, tile_w, w2cat, b2row)

    out_nhwc = out_flat.reshape(B, H, W, Cout)
    return jnp.transpose(out_nhwc, (0, 3, 1, 2))    # back to NCHW


def init_params(key, in_channels, out_channels):
    """Deterministic parameter init; eval-mode BatchNorm folded into conv weights."""
    inter = in_channels // 4
    k1, k2, k3, k4 = jax.random.split(key, 4)
    w1 = jax.random.normal(k1, (KSZ, KSZ, in_channels, inter), jnp.float32) * 0.05
    b1 = jax.random.normal(k2, (inter,), jnp.float32) * 0.05
    w2 = jax.random.normal(k3, (KSZ, KSZ, inter, out_channels), jnp.float32) * 0.05
    b2 = jax.random.normal(k4, (out_channels,), jnp.float32) * 0.05

    eps = 1e-5
    g1 = 1.0 + 0.1 * jnp.arange(inter, dtype=jnp.float32)
    beta1 = 0.01 * jnp.arange(inter, dtype=jnp.float32)
    m1 = 0.02 * jnp.arange(inter, dtype=jnp.float32)
    v1 = 1.0 + 0.05 * jnp.arange(inter, dtype=jnp.float32)
    g2 = 1.0 + 0.1 * jnp.arange(out_channels, dtype=jnp.float32)
    beta2 = 0.01 * jnp.arange(out_channels, dtype=jnp.float32)
    m2 = 0.02 * jnp.arange(out_channels, dtype=jnp.float32)
    v2 = 1.0 + 0.05 * jnp.arange(out_channels, dtype=jnp.float32)

    s1 = g1 / jnp.sqrt(v1 + eps)
    w1f = w1 * s1[None, None, None, :]
    b1f = beta1 + (b1 - m1) * s1
    s2 = g2 / jnp.sqrt(v2 + eps)
    w2f = w2 * s2[None, None, None, :]
    b2f = beta2 + (b2 - m2) * s2
    return w1f, b1f, w2f, b2f


def reference(x_nchw, w1, b1, w2, b2):
    """Pure-JAX reference of the same (BN-folded, eval-mode) forward."""
    x = jnp.transpose(x_nchw, (0, 2, 3, 1))
    dn1 = lax.conv_dimension_numbers(x.shape, w1.shape, ('NHWC', 'HWIO', 'NHWC'))
    y1 = lax.conv_general_dilated(x, w1, (1, 1), ((PAD, PAD), (PAD, PAD)),
                                  dimension_numbers=dn1)
    y1 = jax.nn.relu(y1 + b1)
    x_w = jnp.mean(y1, axis=1, keepdims=True)   # pool over H
    x_h = jnp.mean(y1, axis=2, keepdims=True)   # pool over W
    prod = x_h * x_w
    dn2 = lax.conv_dimension_numbers(prod.shape, w2.shape, ('NHWC', 'HWIO', 'NHWC'))
    y2 = lax.conv_general_dilated(prod, w2, (1, 1), ((PAD, PAD), (PAD, PAD)),
                                  dimension_numbers=dn2)
    y2 = jax.nn.sigmoid(y2 + b2)
    return jnp.transpose(y2, (0, 3, 1, 2))


if __name__ == "__main__":
    key = jax.random.PRNGKey(0)
    kx, kp = jax.random.split(key)
    B, Cin, H, W = 2, 8, 16, 16
    Cout = 8

    x = jax.random.normal(kx, (B, Cin, H, W), jnp.float32)
    w1, b1, w2, b2 = init_params(kp, Cin, Cout)

    out = jax.block_until_ready(spatial_attention(x, w1, b1, w2, b2))

    ref = reference(x, w1, b1, w2, b2)
    np.testing.assert_allclose(np.asarray(out), np.asarray(ref), rtol=2e-4, atol=5e-5)
    print("KERNEL_OK")
</pallas_src>

<mosaic_0001>
module attributes {stable_mosaic.version = 11 : i64} {
  func.func @spatial_attention_kernel(%arg0: i32, %arg1: memref<2x16x128xf32, #tpu.memory_space<vmem>>, %arg2: memref<896x32xf32, #tpu.memory_space<vmem>>, %arg3: memref<1x32xf32, #tpu.memory_space<vmem>>, %arg4: memref<32x2xf32, #tpu.memory_space<vmem>>, %arg5: memref<2x32xf32, #tpu.memory_space<vmem>>, %arg6: memref<224x128xf32, #tpu.memory_space<vmem>>, %arg7: memref<1x128xf32, #tpu.memory_space<vmem>>, %arg8: memref<2x16x128xf32, #tpu.memory_space<vmem>>, %arg9: memref<2x22x128xf32, #tpu.memory_space<vmem>>, %arg10: memref<2x22x32xf32, #tpu.memory_space<vmem>>) attributes {dimension_semantics = [#tpu.dimension_semantics<parallel>], iteration_bounds = array<i64: 1>, scalar_prefetch = 0 : i64, scratch_operands = 2 : i64, tpu.core_type = #tpu.core_type<tc>, window_params = [{transform_indices = @transform_0, window_bounds = array<i64: 2, 16, 128>}, {pipeline_mode = #tpu.pipeline_mode<synchronous>, transform_indices = @transform_1, window_bounds = array<i64: 896, 32>}, {pipeline_mode = #tpu.pipeline_mode<synchronous>, transform_indices = @transform_2, window_bounds = array<i64: 1, 32>}, {pipeline_mode = #tpu.pipeline_mode<synchronous>, transform_indices = @transform_3, window_bounds = array<i64: 32, 2>}, {pipeline_mode = #tpu.pipeline_mode<synchronous>, transform_indices = @transform_4, window_bounds = array<i64: 2, 32>}, {pipeline_mode = #tpu.pipeline_mode<synchronous>, transform_indices = @transform_5, window_bounds = array<i64: 224, 128>}, {pipeline_mode = #tpu.pipeline_mode<synchronous>, transform_indices = @transform_6, window_bounds = array<i64: 1, 128>}, {transform_indices = @transform_7, window_bounds = array<i64: 2, 16, 128>}]} {
    %cst = arith.constant 0.000000e+00 : f32
    %0 = vector.broadcast %cst : f32 to vector<2x22x128xf32>
    %c0 = arith.constant 0 : index
    %c0_0 = arith.constant 0 : index
    %c0_1 = arith.constant 0 : index
    %1 = vector.load %arg9[%c0, %c0_0, %c0_1] : memref<2x22x128xf32, #tpu.memory_space<vmem>>, vector<2x22x128xf32>
    tpu.vector_store %arg9[%c0, %c0_0, %c0_1], %0 {strides = array<i32>} : memref<2x22x128xf32, #tpu.memory_space<vmem>>, vector<2x22x128xf32>,
    %c0_2 = arith.constant 0 : index
    %c0_3 = arith.constant 0 : index
    %c0_4 = arith.constant 0 : index
    %2 = vector.load %arg1[%c0_2, %c0_3, %c0_4] : memref<2x16x128xf32, #tpu.memory_space<vmem>>, vector<2x16x128xf32>
    %c0_5 = arith.constant 0 : index
    %c3 = arith.constant 3 : index
    %c0_6 = arith.constant 0 : index
    %3 = vector.load %arg9[%c0_5, %c3, %c0_6] : memref<2x22x128xf32, #tpu.memory_space<vmem>>, vector<2x16x128xf32>
    tpu.vector_store %arg9[%c0_5, %c3, %c0_6], %2 {strides = array<i32>} : memref<2x22x128xf32, #tpu.memory_space<vmem>>, vector<2x16x128xf32>,
    %c0_7 = arith.constant 0 : index
    %c0_8 = arith.constant 0 : index
    %c0_9 = arith.constant 0 : index
    %4 = vector.load %arg9[%c0_7, %c0_8, %c0_9] : memref<2x22x128xf32, #tpu.memory_space<vmem>>, vector<2x16x128xf32>
    %c0_10 = arith.constant 0 : index
    %c1 = arith.constant 1 : index
    %c0_11 = arith.constant 0 : index
    %5 = vector.load %arg9[%c0_10, %c1, %c0_11] : memref<2x22x128xf32, #tpu.memory_space<vmem>>, vector<2x16x128xf32>
    %c0_12 = arith.constant 0 : index
    %c2 = arith.constant 2 : index
    %c0_13 = arith.constant 0 : index
    %6 = vector.load %arg9[%c0_12, %c2, %c0_13] : memref<2x22x128xf32, #tpu.memory_space<vmem>>, vector<2x16x128xf32>
    %c0_14 = arith.constant 0 : index
    %c3_15 = arith.constant 3 : index
    %c0_16 = arith.constant 0 : index
    %7 = vector.load %arg9[%c0_14, %c3_15, %c0_16] : memref<2x22x128xf32, #tpu.memory_space<vmem>>, vector<2x16x128xf32>
    %c0_17 = arith.constant 0 : index
    %c4 = arith.constant 4 : index
    %c0_18 = arith.constant 0 : index
    %8 = vector.load %arg9[%c0_17, %c4, %c0_18] : memref<2x22x128xf32, #tpu.memory_space<vmem>>, vector<2x16x128xf32>
    %c0_19 = arith.constant 0 : index
    %c5 = arith.constant 5 : index
    %c0_20 = arith.constant 0 : index
    %9 = vector.load %arg9[%c0_19, %c5, %c0_20] : memref<2x22x128xf32, #tpu.memory_space<vmem>>, vector<2x16x128xf32>
    %c0_21 = arith.constant 0 : index
    %c6 = arith.constant 6 : index
    %c0_22 = arith.constant 0 : index
    %10 = vector.load %arg9[%c0_21, %c6, %c0_22] : memref<2x22x128xf32, #tpu.memory_space<vmem>>, vector<2x16x128xf32>
    %11 = tpu.concatenate %4, %5, %6, %7, %8, %9, %10 in 2 : vector<2x16x128xf32>, vector<2x16x128xf32>, vector<2x16x128xf32>, vector<2x16x128xf32>, vector<2x16x128xf32>, vector<2x16x128xf32>, vector<2x16x128xf32> -> vector<2x16x896xf32>
    %12 = vector.shape_cast %11 : vector<2x16x896xf32> to vector<32x896xf32>
    %c0_23 = arith.constant 0 : index
    %c0_24 = arith.constant 0 : index
    %13 = vector.load %arg2[%c0_23, %c0_24] : memref<896x32xf32, #tpu.memory_space<vmem>>, vector<896x32xf32>
    %cst_25 = arith.constant dense<0.000000e+00> : vector<32x32xf32>
    %14 = tpu.matmul %12, %13, %cst_25 {dimension_numbers = #tpu.dot_dimension_numbers<[1], [0], [0], [1], [0, 0, 1, 1], [], []>} : vector<32x896xf32>, vector<896x32xf32>, vector<32x32xf32> -> vector<32x32xf32>
    %c0_26 = arith.constant 0 : index
    %c0_27 = arith.constant 0 : index
    %15 = vector.load %arg3[%c0_26, %c0_27] : memref<1x32xf32, #tpu.memory_space<vmem>>, vector<1x32xf32>
    %16 = vector.broadcast %15 : vector<1x32xf32> to vector<32x32xf32>
    %17 = arith.addf %14, %16 : vector<32x32xf32>
    %cst_28 = arith.constant 0.000000e+00 : f32
    %18 = vector.broadcast %cst_28 : f32 to vector<32x32xf32>
    %19 = arith.maximumf %17, %18 : vector<32x32xf32>
    %20 = vector.shape_cast %19 : vector<32x32xf32> to vector<2x16x32xf32>
    %cst_29 = arith.constant dense<0.000000e+00> : vector<2x32xf32>
    %21 = vector.multi_reduction <add>, %20, %cst_29 [1] : vector<2x16x32xf32> to vector<2x32xf32>
    %22 = vector.shape_cast %21 : vector<2x32xf32> to vector<2x1x32xf32>
    %cst_30 = arith.constant 1.600000e+01 : f32
    %23 = vector.broadcast %cst_30 : f32 to vector<2x1x32xf32>
    %24 = arith.divf %22, %23 : vector<2x1x32xf32>
    %c0_31 = arith.constant 0 : index
    %c0_32 = arith.constant 0 : index
    %25 = vector.load %arg4[%c0_31, %c0_32] : memref<32x2xf32, #tpu.memory_space<vmem>>, vector<32x2xf32>
    %cst_33 = arith.constant dense<0.000000e+00> : vector<32x2xf32>
    %26 = tpu.matmul %19, %25, %cst_33 {dimension_numbers = #tpu.dot_dimension_numbers<[1], [0], [0], [1], [0, 0, 1, 1], [], []>} : vector<32x32xf32>, vector<32x2xf32>, vector<32x2xf32> -> vector<32x2xf32>
    %c0_34 = arith.constant 0 : index
    %c0_35 = arith.constant 0 : index
    %27 = vector.load %arg5[%c0_34, %c0_35] : memref<2x32xf32, #tpu.memory_space<vmem>>, vector<2x32xf32>
    %cst_36 = arith.constant dense<0.000000e+00> : vector<32x32xf32>
    %28 = tpu.matmul %26, %27, %cst_36 {dimension_numbers = #tpu.dot_dimension_numbers<[1], [0], [0], [1], [0, 0, 1, 1], [], []>} : vector<32x2xf32>, vector<2x32xf32>, vector<32x32xf32> -> vector<32x32xf32>
    %29 = vector.shape_cast %28 : vector<32x32xf32> to vector<2x16x32xf32>
    %30 = vector.broadcast %24 : vector<2x1x32xf32> to vector<2x16x32xf32>
    %31 = arith.mulf %29, %30 : vector<2x16x32xf32>
    %cst_37 = arith.constant 0.000000e+00 : f32
    %32 = vector.broadcast %cst_37 : f32 to vector<2x22x32xf32>
    %c0_38 = arith.constant 0 : index
    %c0_39 = arith.constant 0 : index
    %c0_40 = arith.constant 0 : index
    %33 = vector.load %arg10[%c0_38, %c0_39, %c0_40] : memref<2x22x32xf32, #tpu.memory_space<vmem>>, vector<2x22x32xf32>
    tpu.vector_store %arg10[%c0_38, %c0_39, %c0_40], %32 {strides = array<i32>} : memref<2x22x32xf32, #tpu.memory_space<vmem>>, vector<2x22x32xf32>,
    %c0_41 = arith.constant 0 : index
    %c3_42 = arith.constant 3 : index
    %c0_43 = arith.constant 0 : index
    %34 = vector.load %arg10[%c0_41, %c3_42, %c0_43] : memref<2x22x32xf32, #tpu.memory_space<vmem>>, vector<2x16x32xf32>
    tpu.vector_store %arg10[%c0_41, %c3_42, %c0_43], %31 {strides = array<i32>} : memref<2x22x32xf32, #tpu.memory_space<vmem>>, vector<2x16x32xf32>,
    %c0_44 = arith.constant 0 : index
    %c0_45 = arith.constant 0 : index
    %c0_46 = arith.constant 0 : index
    %35 = vector.load %arg10[%c0_44, %c0_45, %c0_46] : memref<2x22x32xf32, #tpu.memory_space<vmem>>, vector<2x16x32xf32>
    %c0_47 = arith.constant 0 : index
    %c1_48 = arith.constant 1 : index
    %c0_49 = arith.constant 0 : index
    %36 = vector.load %arg10[%c0_47, %c1_48, %c0_49] : memref<2x22x32xf32, #tpu.memory_space<vmem>>, vector<2x16x32xf32>
    %c0_50 = arith.constant 0 : index
    %c2_51 = arith.constant 2 : index
    %c0_52 = arith.constant 0 : index
    %37 = vector.load %arg10[%c0_50, %c2_51, %c0_52] : memref<2x22x32xf32, #tpu.memory_space<vmem>>, vector<2x16x32xf32>
    %c0_53 = arith.constant 0 : index
    %c3_54 = arith.constant 3 : index
    %c0_55 = arith.constant 0 : index
    %38 = vector.load %arg10[%c0_53, %c3_54, %c0_55] : memref<2x22x32xf32, #tpu.memory_space<vmem>>, vector<2x16x32xf32>
    %c0_56 = arith.constant 0 : index
    %c4_57 = arith.constant 4 : index
    %c0_58 = arith.constant 0 : index
    %39 = vector.load %arg10[%c0_56, %c4_57, %c0_58] : memref<2x22x32xf32, #tpu.memory_space<vmem>>, vector<2x16x32xf32>
    %c0_59 = arith.constant 0 : index
    %c5_60 = arith.constant 5 : index
    %c0_61 = arith.constant 0 : index
    %40 = vector.load %arg10[%c0_59, %c5_60, %c0_61] : memref<2x22x32xf32, #tpu.memory_space<vmem>>, vector<2x16x32xf32>
    %c0_62 = arith.constant 0 : index
    %c6_63 = arith.constant 6 : index
    %c0_64 = arith.constant 0 : index
    %41 = vector.load %arg10[%c0_62, %c6_63, %c0_64] : memref<2x22x32xf32, #tpu.memory_space<vmem>>, vector<2x16x32xf32>
    %42 = tpu.concatenate %35, %36, %37, %38, %39, %40, %41 in 2 : vector<2x16x32xf32>, vector<2x16x32xf32>, vector<2x16x32xf32>, vector<2x16x32xf32>, vector<2x16x32xf32>, vector<2x16x32xf32>, vector<2x16x32xf32> -> vector<2x16x224xf32>
    %43 = vector.shape_cast %42 : vector<2x16x224xf32> to vector<32x224xf32>
    %c0_65 = arith.constant 0 : index
    %c0_66 = arith.constant 0 : index
    %44 = vector.load %arg6[%c0_65, %c0_66] : memref<224x128xf32, #tpu.memory_space<vmem>>, vector<224x128xf32>
    %cst_67 = arith.constant dense<0.000000e+00> : vector<32x128xf32>
    %45 = tpu.matmul %43, %44, %cst_67 {dimension_numbers = #tpu.dot_dimension_numbers<[1], [0], [0], [1], [0, 0, 1, 1], [], []>} : vector<32x224xf32>, vector<224x128xf32>, vector<32x128xf32> -> vector<32x128xf32>
    %c0_68 = arith.constant 0 : index
    %c0_69 = arith.constant 0 : index
    %46 = vector.load %arg7[%c0_68, %c0_69] : memref<1x128xf32, #tpu.memory_space<vmem>>, vector<1x128xf32>
    %47 = vector.broadcast %46 : vector<1x128xf32> to vector<32x128xf32>
    %48 = arith.addf %45, %47 : vector<32x128xf32>
    %49 = arith.negf %48 : vector<32x128xf32>
    %50 = math.exp %49 : vector<32x128xf32>
    %cst_70 = arith.constant 1.000000e+00 : f32
    %51 = vector.broadcast %cst_70 : f32 to vector<32x128xf32>
    %52 = arith.addf %51, %50 : vector<32x128xf32>
    %53 = arith.divf %51, %52 : vector<32x128xf32>
    %54 = vector.shape_cast %53 : vector<32x128xf32> to vector<2x16x128xf32>
    %c0_71 = arith.constant 0 : index
    %c0_72 = arith.constant 0 : index
    %c0_73 = arith.constant 0 : index
    %55 = vector.load %arg8[%c0_71, %c0_72, %c0_73] : memref<2x16x128xf32, #tpu.memory_space<vmem>>, vector<2x16x128xf32>
    tpu.vector_store %arg8[%c0_71, %c0_72, %c0_73], %54 {strides = array<i32>} : memref<2x16x128xf32, #tpu.memory_space<vmem>>, vector<2x16x128xf32>,
    return
  }
  func.func @transform_0(%arg0: i32) -> (i32, i32, i32) {
    %c0_i32 = arith.constant 0 : i32
    %c0_i32_0 = arith.constant 0 : i32
    %c0_i32_1 = arith.constant 0 : i32
    return %arg0, %c0_i32, %c0_i32_0 : i32, i32, i32
  }
  func.func @transform_1(%arg0: i32) -> (i32, i32) {
    %c0_i32 = arith.constant 0 : i32
    %c0_i32_0 = arith.constant 0 : i32
    %c0_i32_1 = arith.constant 0 : i32
    return %c0_i32, %c0_i32_0 : i32, i32
  }
  func.func @transform_2(%arg0: i32) -> (i32, i32) {
    %c0_i32 = arith.constant 0 : i32
    %c0_i32_0 = arith.constant 0 : i32
    %c0_i32_1 = arith.constant 0 : i32
    return %c0_i32, %c0_i32_0 : i32, i32
  }
  func.func @transform_3(%arg0: i32) -> (i32, i32) {
    %c0_i32 = arith.constant 0 : i32
    %c0_i32_0 = arith.constant 0 : i32
    %c0_i32_1 = arith.constant 0 : i32
    return %c0_i32, %c0_i32_0 : i32, i32
  }
  func.func @transform_4(%arg0: i32) -> (i32, i32) {
    %c0_i32 = arith.constant 0 : i32
    %c0_i32_0 = arith.constant 0 : i32
    %c0_i32_1 = arith.constant 0 : i32
    return %c0_i32, %c0_i32_0 : i32, i32
  }
  func.func @transform_5(%arg0: i32) -> (i32, i32) {
    %c0_i32 = arith.constant 0 : i32
    %c0_i32_0 = arith.constant 0 : i32
    %c0_i32_1 = arith.constant 0 : i32
    return %c0_i32, %c0_i32_0 : i32, i32
  }
  func.func @transform_6(%arg0: i32) -> (i32, i32) {
    %c0_i32 = arith.constant 0 : i32
    %c0_i32_0 = arith.constant 0 : i32
    %c0_i32_1 = arith.constant 0 : i32
    return %c0_i32, %c0_i32_0 : i32, i32
  }
  func.func @transform_7(%arg0: i32) -> (i32, i32, i32) {
    %c0_i32 = arith.constant 0 : i32
    %c0_i32_0 = arith.constant 0 : i32
    %c0_i32_1 = arith.constant 0 : i32
    return %arg0, %c0_i32, %c0_i32_0 : i32, i32, i32
  }
}

</mosaic_0001>

<bundles_post_ra>
// kernel: tpu_custom_call.1
= control target key start
LH: loop header
LB: loop body
LE: loop exit
PB: predicated region body
PF: predicated region fallthrough
CT: control target
= control target key end

     0   :  { %v1393_v4 = vmov 0.0   ;;  %s2012_s0 = inlined_call_operand.vmem [shape: f32[2,16,128], index: 0, kind: input, shape index: {}]   ;;  %s2013_s1 = inlined_call_operand.vmem [shape: f32[896,32], index: 1, kind: input, shape index: {}]   ;;  %s2014_s2 = inlined_call_operand.vmem [shape: f32[1,32], index: 2, kind: input, shape index: {}]   ;;  %s2015_s3 = inlined_call_operand.vmem [shape: f32[32,2], index: 3, kind: input, shape index: {}]   ;;  %s2016_s4 = inlined_call_operand.vmem [shape: f32[2,32], index: 4, kind: input, shape index: {}]   ;;  %s2017_s5 = inlined_call_operand.vmem [shape: f32[224,128], index: 5, kind: input, shape index: {}]   ;;  %s2018_s6 = inlined_call_operand.vmem [shape: f32[1,128], index: 6, kind: input, shape index: {}]   ;;  %s2019_s7 = inlined_call_operand.hbm [shape: f32[2,16,128], index: 7, kind: output, shape index: {}]  }
   0x1   :  { %v100_v0 = vld [vmem:[%s2013_s1 + $0xf8] sm:$0xff]  ;;  %v99_v2 = vld [vmem:[%s2013_s1 + $0xf0] sm:$0xff]  ;;  %27 = vst [vmem:[#allocation2] sm:$0xff] %v1393_v4  ;;  %28 = vst [vmem:[#allocation2 + $0x8] sm:$0xff] %v1393_v4 }
   0x2   :  { %v84_v1 = vld [vmem:[%s2013_s1 + $0x78] sm:$0xff]  ;;  %1098 = vmatprep.subr.mxu0 %v100_v0  ;;  %v83_v3 = vld [vmem:[%s2013_s1 + $0x70] sm:$0xff]  ;;  %29 = vst [vmem:[#allocation2 + $0x10] sm:$0x3f] %v1393_v4  ;;  %30 = vst [vmem:[#allocation2 + $0x18] sm:$0xff] %v1393_v4 }
   0x3   :  { %31 = vst [vmem:[#allocation2 + $0x20] sm:$0xff] %v1393_v4  ;;  %32 = vst [vmem:[#allocation2 + $0x28] sm:$0x3f] %v1393_v4  ;;  %1099 = vmatpush3.msra.mxu0 %v84_v1  ;;  %v98_v5 = vld [vmem:[%s2013_s1 + $0xe8] sm:$0xff]  ;;  %v97_v7 = vld [vmem:[%s2013_s1 + $0xe0] sm:$0xff] }
   0x4   :  { %1100 = vmatprep.subr.mxu0 %v99_v2  ;;  %v82_v6 = vld [vmem:[%s2013_s1 + $0x68] sm:$0xff]  ;;  %v81_v8 = vld [vmem:[%s2013_s1 + $0x60] sm:$0xff]  ;;  %v96_v9 = vld [vmem:[%s2013_s1 + $0xd8] sm:$0xff] }
   0x5   :  { %1101 = vmatpush3.msra.mxu0 %v83_v3  ;;  %v80_v10 = vld [vmem:[%s2013_s1 + $0x58] sm:$0xff]  ;;  %v95_v11 = vld [vmem:[%s2013_s1 + $0xd0] sm:$0xff]  ;;  %v94_v13 = vld [vmem:[%s2013_s1 + $0xc8] sm:$0xff] }
   0x6   :  { %1102 = vmatprep.subr.mxu0 %v98_v5  ;;  %v79_v12 = vld [vmem:[%s2013_s1 + $0x50] sm:$0xff]  ;;  %v1488_v14 = vld [vmem:[%s2012_s0] sm:$0xff]  ;;  %v78_v15 = vld [vmem:[%s2013_s1 + $0x48] sm:$0xff] }
   0x7   :  { %1103 = vmatpush3.msra.mxu0 %v82_v6  ;;  %37 = vst [vmem:[#allocation2 + $0x3] sm:$0xff] %v1488_v14  ;;  %v93_v16 = vld [vmem:[%s2013_s1 + $0xc0] sm:$0xff]  ;;  %v92_v18 = vld [vmem:[%s2013_s1 + $0xb8] sm:$0xff]  ;;  %v91_v20 = vld [vmem:[%s2013_s1 + $0xb0] sm:$0xff] }
   0x8   :  { %1104 = vmatprep.subr.mxu0 %v97_v7  ;;  %v77_v17 = vld [vmem:[%s2013_s1 + $0x40] sm:$0xff]  ;;  %v76_v19 = vld [vmem:[%s2013_s1 + $0x38] sm:$0xff]  ;;  %v75_v21 = vld [vmem:[%s2013_s1 + $0x30] sm:$0xff] }
   0x9   :  { %1105 = vmatpush3.msra.mxu0 %v81_v8  ;;  %v1515_v22 = vld [vmem:[%s2012_s0 + $0x8] sm:$0xff]  ;;  %v1527_v26 = vld [vmem:[%s2012_s0 + $0x10] sm:$0xff]  ;;  %v89_v27 = vld [vmem:[%s2013_s1 + $0xa0] sm:$0xff] }
   0xa   :  { %1106 = vmatprep.subr.mxu0 %v96_v9  ;;  %v90_v23 = vld [vmem:[%s2013_s1 + $0xa8] sm:$0xff]  ;;  %38 = vst [vmem:[#allocation2 + $0xb] sm:$0xff] %v1515_v22  ;;  %39 = vst [vmem:[#allocation2 + $0x1b] sm:$0xff] %v1527_v26  ;;  %v73_v28 = vld [vmem:[%s2013_s1 + $0x20] sm:$0xff] }
   0xb   :  { %1107 = vmatpush3.msra.mxu0 %v80_v10  ;;  %v74_v25 = vld [vmem:[%s2013_s1 + $0x28] sm:$0xff]  ;;  %v1539_v29 = vld [vmem:[%s2012_s0 + $0x18] sm:$0xff]  ;;  %v87_v32 = vld [vmem:[%s2013_s1 + $0x90] sm:$0xff] }
   0xc   :  { %1108 = vmatprep.subr.mxu0 %v95_v11  ;;  %v88_v30 = vld [vmem:[%s2013_s1 + $0x98] sm:$0xff]  ;;  %40 = vst [vmem:[#allocation2 + $0x23] sm:$0xff] %v1539_v29  ;;  %v71_v33 = vld [vmem:[%s2013_s1 + $0x10] sm:$0xff]  ;;  %v86_v34 = vld [vmem:[%s2013_s1 + $0x88] sm:$0xff] }
   0xd   :  { %1109 = vmatpush3.msra.mxu0 %v79_v12  ;;  %v72_v31 = vld [vmem:[%s2013_s1 + $0x18] sm:$0xff]  ;;  %v70_v36 = vld [vmem:[%s2013_s1 + $0x8] sm:$0xff]  ;;  %v85_v37 = vld [vmem:[%s2013_s1 + $0x80] sm:$0xff] }
   0xe   :  { %1110 = vmatprep.subr.mxu0 %v94_v13  ;;  %v45_v24 = vld [vmem:[#allocation2 + $0x1] sm:$0xff]  ;;  %v180_v35 = vld [vmem:[%s2013_s1 + $0x378] sm:$0xff]  ;;  %v179_v38 = vld [vmem:[%s2013_s1 + $0x370] sm:$0xff] }
   0xf   :  { %1111 = vmatpush3.msra.mxu0 %v78_v15  ;;  %252 = vmatprep.mubr.f32.mxu0 %v45_v24  ;;  %v69_v39 = vld [vmem:[%s2013_s1] sm:$0xff]  ;;  %v132_v41 = vld [vmem:[%s2013_s1 + $0x1f8] sm:$0xff]  ;;  %v178_v42 = vld [vmem:[%s2013_s1 + $0x368] sm:$0xff] }
  0x10   :  { %1112 = vmatprep.subr.mxu0 %v93_v16  ;;  %1263 = vmatprep.subr.mxu1 %v180_v35  ;;  %v41_v40 = vld [vmem:[#allocation2] sm:$0xff]  ;;  %v116_v43 = vld [vmem:[%s2013_s1 + $0x178] sm:$0xff]  ;;  %v131_v45 = vld [vmem:[%s2013_s1 + $0x1f0] sm:$0xff] }
  0x11   :  { %1113 = vmatpush3.msra.mxu0 %v77_v17  ;;  %1264 = vmatpush3.msra.mxu1 %v180_v35  ;;  %v46_v44 = vld [vmem:[#allocation2 + $0x9] sm:$0xff]  ;;  %v177_v46 = vld [vmem:[%s2013_s1 + $0x360] sm:$0xff]  ;;  %v176_v53 = vld [vmem:[%s2013_s1 + $0x358] sm:$0xff] }
  0x12   :  { %1114 = vmatprep.subr.mxu0 %v92_v18  ;;  %1265 = vmatprep.subr.mxu1 %v179_v38  ;;  %v115_v47 = vld [vmem:[%s2013_s1 + $0x170] sm:$0xff]  ;;  %v130_v48 = vld [vmem:[%s2013_s1 + $0x1e8] sm:$0xff]  ;;  %v47_v51 = vld [vmem:[#allocation2 + $0x19] sm:$0xff] }
  0x13   :  { %1115 = vmatpush3.msra.mxu0 %v76_v19  ;;  %1266 = vmatpush3.msra.mxu1 %v179_v38  ;;  %v42_v49 = vld [vmem:[#allocation2 + $0x8] sm:$0xff]  ;;  %v129_v52 = vld [vmem:[%s2013_s1 + $0x1e0] sm:$0xff]  ;;  %v128_v55 = vld [vmem:[%s2013_s1 + $0x1d8] sm:$0xff] }
  0x14   :  { %1116 = vmatprep.subr.mxu0 %v91_v20  ;;  %1267 = vmatprep.subr.mxu1 %v178_v42  ;;  %v114_v50 = vld [vmem:[%s2013_s1 + $0x168] sm:$0xff]  ;;  %v113_v54 = vld [vmem:[%s2013_s1 + $0x160] sm:$0xff]  ;;  %v43_v56 = vld [vmem:[#allocation2 + $0x18] sm:$0xff] }
  0x15   :  { %1117 = vmatpush3.msra.mxu0 %v75_v21  ;;  %1268 = vmatpush3.msra.mxu1 %v178_v42  ;;  %v112_v57 = vld [vmem:[%s2013_s1 + $0x158] sm:$0xff]  ;;  %v48_v58 = vld [vmem:[#allocation2 + $0x21] sm:$0xff]  ;;  %v127_v59 = vld [vmem:[%s2013_s1 + $0x1d0] sm:$0xff] }
  0x16   :  { %1118 = vmatprep.subr.mxu0 %v90_v23  ;;  %1269 = vmatprep.subr.mxu1 %v177_v46  ;;  %v175_v60 = vld [vmem:[%s2013_s1 + $0x350] sm:$0xff]  ;;  %v126_v62 = vld [vmem:[%s2013_s1 + $0x1c8] sm:$0xff]  ;;  %v44_v63 = vld [vmem:[#allocation2 + $0x20] sm:$0xff] }
  0x17   :  { %1119 = vmatpush3.msra.mxu0 %v74_v25  ;;  %1270 = vmatpush3.msra.mxu1 %v177_v46  ;;  %v111_v61 = vld [vmem:[%s2013_s1 + $0x150] sm:$0xff]  ;;  %v110_v0 = vld [vmem:[%s2013_s1 + $0x148] sm:$0xff]  ;;  %v125_v1 = vld [vmem:[%s2013_s1 + $0x1c0] sm:$0xff] }
  0x18   :  { %1120 = vmatprep.subr.mxu0 %v89_v27  ;;  %1271 = vmatprep.subr.mxu1 %v176_v53  ;;  %v174_v2 = vld [vmem:[%s2013_s1 + $0x348] sm:$0xff]  ;;  %v109_v3 = vld [vmem:[%s2013_s1 + $0x140] sm:$0xff]  ;;  %v124_v5 = vld [vmem:[%s2013_s1 + $0x1b8] sm:$0xff] }
  0x19   :  { %1121 = vmatpush3.msra.mxu0 %v73_v28  ;;  %1272 = vmatpush3.msra.mxu1 %v176_v53  ;;  %v173_v6 = vld [vmem:[%s2013_s1 + $0x340] sm:$0xff] }
  0x1a   :  { %1122 = vmatprep.subr.mxu0 %v88_v30  ;;  %1273 = vmatprep.subr.mxu1 %v175_v60 }
  0x1b   :  { %1123 = vmatpush3.msra.mxu0 %v72_v31  ;;  %1274 = vmatpush3.msra.mxu1 %v175_v60 }
  0x1c   :  { %1124 = vmatprep.subr.mxu0 %v87_v32 }
  0x1d   :  { %1125 = vmatpush3.msra.mxu0 %v71_v33 }
  0x1e   :  { %1126 = vmatprep.subr.mxu0 %v86_v34 }
  0x1f   :  { %1127 = vmatpush3.msra.mxu0 %v70_v36 }
  0x20   :  { %1128 = vmatprep.subr.mxu0 %v85_v37 }
  0x21   :  { %1129 = vmatpush3.msra.mxu0 %v69_v39 }
  0x22   :  { %253 = vmatmul.mubr.f32.vlgmr.msra.gmra.mxu0 %v41_v40  ;;  %1142 = vmatprep.subr.mxu0 %v132_v41 }
  0x23   :  { %1143 = vmatpush3.msra.mxu0 %v116_v43  ;;  %257 = vmatprep.mubr.f32.mxu0 %v46_v44 }
  0x24   :  { %1144 = vmatprep.subr.mxu0 %v131_v45 }
  0x25   :  { %1145 = vmatpush3.msra.mxu0 %v115_v47 }
  0x26   :  { %1146 = vmatprep.subr.mxu0 %v130_v48  ;;  %258 = vmatmul.mubr.f32.gmra.mxu0 %v42_v49 }
  0x27   :  { %1147 = vmatpush3.msra.mxu0 %v114_v50  ;;  %262 = vmatprep.mubr.f32.mxu0 %v47_v51 }
  0x28   :  { %1148 = vmatprep.subr.mxu0 %v129_v52 }
  0x29   :  { %1149 = vmatpush3.msra.mxu0 %v113_v54 }
  0x2a   :  { %1150 = vmatprep.subr.mxu0 %v128_v55  ;;  %263 = vmatmul.mubr.f32.gmra.mxu0 %v43_v56 }
  0x2b   :  { %1151 = vmatpush3.msra.mxu0 %v112_v57  ;;  %267 = vmatprep.mubr.f32.mxu0 %v48_v58 }
  0x2c   :  { %1152 = vmatprep.subr.mxu0 %v127_v59 }
  0x2d   :  { %1153 = vmatpush3.msra.mxu0 %v111_v61 }
  0x2e   :  { %1154 = vmatprep.subr.mxu0 %v126_v62  ;;  %268 = vmatmul.mubr.f32.gmra.mxu0 %v44_v63 }
  0x2f   :  { %1155 = vmatpush3.msra.mxu0 %v110_v0  ;;  %337 = vmatprep.mubr.f32.mxu0 %v1488_v14 }
  0x30   :  { %12 = vsyncpa [#allocation5], 0  ;;  %1156 = vmatprep.subr.mxu0 %v125_v1  ;;  %v108_v7 = vld [vmem:[%s2013_s1 + $0x138] sm:$0xff]  ;;  %1275 = vmatprep.subr.mxu1 %v174_v2  ;;  %v123_v8 = vld [vmem:[%s2013_s1 + $0x1b0] sm:$0xff]  ;;  %vm532_vm0 = vcmask 261120   ;;  %vm669_vm1 = vcmask 1041408  }
  0x31   :  { %1157 = vmatpush3.msra.mxu0 %v109_v3  ;;  %1276 = vmatpush3.msra.mxu1 %v174_v2  ;;  %v172_v9 = vld [vmem:[%s2013_s1 + $0x338] sm:$0xff]  ;;  %v107_v10 = vld [vmem:[%s2013_s1 + $0x130] sm:$0xff]  ;;  %v122_v11 = vld [vmem:[%s2013_s1 + $0x1a8] sm:$0xff]  ;;  %762 = vst.msk [vmem:[#allocation3] sm:$0xff] %vm532_vm0, %v1393_v4  ;;  %vm656_vm2 = vcmask 15360   ;;  %vm764_vm3 = vcmask 259072  }
  0x32   :  { %1158 = vmatprep.subr.mxu0 %v124_v5  ;;  %1277 = vmatprep.subr.mxu1 %v173_v6  ;;  %v171_v12 = vld [vmem:[%s2013_s1 + $0x330] sm:$0xff]  ;;  %v106_v13 = vld [vmem:[%s2013_s1 + $0x128] sm:$0xff]  ;;  %v121_v14 = vld [vmem:[%s2013_s1 + $0x1a0] sm:$0xff]  ;;  %763 = vst.msk [vmem:[#allocation3 + $0x8] sm:$0xff] %vm532_vm0, %v1393_v4  ;;  %s1394_s25 = smov 64   ;;  %s1395_s26 = smov 32  }
  0x33   :  { %1159 = vmatpush3.msra.mxu0 %v108_v7  ;;  %1278 = vmatpush3.msra.mxu1 %v173_v6  ;;  %v170_v15 = vld [vmem:[%s2013_s1 + $0x328] sm:$0xff]  ;;  %v105_v16 = vld [vmem:[%s2013_s1 + $0x120] sm:$0xff]  ;;  %v120_v17 = vld [vmem:[%s2013_s1 + $0x198] sm:$0xff]  ;;  %766 = vst.msk [vmem:[#allocation3 + $0x18] sm:$0xff] %vm532_vm0, %v1393_v4  ;;  %vm890_vm4 = vcmask 785408   ;;  %vm885_vm5 = vcmask 523264  }
  0x34   :  { %1160 = vmatprep.subr.mxu0 %v123_v8  ;;  %1279 = vmatprep.subr.mxu1 %v172_v9  ;;  %v169_v18 = vld [vmem:[%s2013_s1 + $0x320] sm:$0xff]  ;;  %v104_v19 = vld [vmem:[%s2013_s1 + $0x118] sm:$0xff]  ;;  %v119_v20 = vld [vmem:[%s2013_s1 + $0x190] sm:$0xff]  ;;  %767 = vst.msk [vmem:[#allocation3 + $0x20] sm:$0xff] %vm532_vm0, %v1393_v4 }
  0x35   :  { %1161 = vmatpush3.msra.mxu0 %v107_v10  ;;  %1280 = vmatpush3.msra.mxu1 %v172_v9  ;;  %v168_v21 = vld [vmem:[%s2013_s1 + $0x318] sm:$0xff]  ;;  %v103_v23 = vld [vmem:[%s2013_s1 + $0x110] sm:$0xff]  ;;  %v118_v24 = vld [vmem:[%s2013_s1 + $0x188] sm:$0xff]  ;;  %765 = vst.msk [vmem:[#allocation3 + $0x10] sm:$0x3f] %vm764_vm3, %v1393_v4 }
  0x36   :  { %1162 = vmatprep.subr.mxu0 %v122_v11  ;;  %1281 = vmatprep.subr.mxu1 %v171_v12  ;;  %v167_v25 = vld [vmem:[%s2013_s1 + $0x310] sm:$0xff]  ;;  %v102_v27 = vld [vmem:[%s2013_s1 + $0x108] sm:$0xff]  ;;  %v117_v28 = vld [vmem:[%s2013_s1 + $0x180] sm:$0xff]  ;;  %768 = vst.msk [vmem:[#allocation3 + $0x28] sm:$0x3f] %vm764_vm3, %v1393_v4 }
  0x37   :  { %1163 = vmatpush3.msra.mxu0 %v106_v13  ;;  %1282 = vmatpush3.msra.mxu1 %v171_v12  ;;  %v166_v30 = vld [vmem:[%s2013_s1 + $0x308] sm:$0xff]  ;;  %v101_v31 = vld [vmem:[%s2013_s1 + $0x100] sm:$0xff]  ;;  %v164_v33 = vld [vmem:[%s2013_s1 + $0x2f8] sm:$0xff] }
  0x38   :  { %1164 = vmatprep.subr.mxu0 %v121_v14  ;;  %1283 = vmatprep.subr.mxu1 %v170_v15  ;;  %v49_v32 = vld [vmem:[#allocation2 + $0x2] sm:$0xff]  ;;  %v148_v34 = vld [vmem:[%s2013_s1 + $0x278] sm:$0xff]  ;;  %v163_v35 = vld [vmem:[%s2013_s1 + $0x2f0] sm:$0xff] }
  0x39   :  { %1165 = vmatpush3.msra.mxu0 %v105_v16  ;;  %1284 = vmatpush3.msra.mxu1 %v170_v15  ;;  %v165_v36 = vld [vmem:[%s2013_s1 + $0x300] sm:$0xff]  ;;  %v147_v37 = vld [vmem:[%s2013_s1 + $0x270] sm:$0xff]  ;;  %v162_v39 = vld [vmem:[%s2013_s1 + $0x2e8] sm:$0xff] }
  0x3a   :  { %1166 = vmatprep.subr.mxu0 %v120_v17  ;;  %1285 = vmatprep.subr.mxu1 %v169_v18  ;;  %v50_v38 = vld [vmem:[#allocation2 + $0xa] sm:$0xff]  ;;  %v161_v41 = vld [vmem:[%s2013_s1 + $0x2e0] sm:$0xff]  ;;  %v160_v45 = vld [vmem:[%s2013_s1 + $0x2d8] sm:$0xff] }
  0x3b   :  { %1167 = vmatpush3.msra.mxu0 %v104_v19  ;;  %1286 = vmatpush3.msra.mxu1 %v169_v18  ;;  %v146_v40 = vld [vmem:[%s2013_s1 + $0x268] sm:$0xff]  ;;  %v51_v44 = vld [vmem:[#allocation2 + $0x1a] sm:$0xff]  ;;  %v159_v47 = vld [vmem:[%s2013_s1 + $0x2d0] sm:$0xff] }
  0x3c   :  { %1168 = vmatprep.subr.mxu0 %v119_v20  ;;  %1287 = vmatprep.subr.mxu1 %v168_v21  ;;  %v65_v42 = vld [vmem:[#allocation2 + $0x6] sm:$0xff]  ;;  %v66_v43 = vld [vmem:[#allocation2 + $0xe] sm:$0xff]  ;;  %v144_v46 = vld [vmem:[%s2013_s1 + $0x258] sm:$0xff] }
  0x3d   :  { %1169 = vmatpush3.msra.mxu0 %v103_v23  ;;  %1288 = vmatpush3.msra.mxu1 %v168_v21  ;;  %v67_v48 = vld [vmem:[#allocation2 + $0x1e] sm:$0xff]  ;;  %v68_v49 = vld [vmem:[#allocation2 + $0x26] sm:$0xff]  ;;  %v155_v57 = vld [vmem:[%s2013_s1 + $0x2b0] sm:$0xff] }
  0x3e   :  { %1170 = vmatprep.subr.mxu0 %v118_v24  ;;  %1289 = vmatprep.subr.mxu1 %v167_v25  ;;  %v52_v50 = vld [vmem:[#allocation2 + $0x22] sm:$0xff]  ;;  %v156_v55 = vld [vmem:[%s2013_s1 + $0x2b8] sm:$0xff]  ;;  %v139_v58 = vld [vmem:[%s2013_s1 + $0x230] sm:$0xff] }
  0x3f   :  { %1171 = vmatpush3.msra.mxu0 %v102_v27  ;;  %1290 = vmatpush3.msra.mxu1 %v167_v25  ;;  %v158_v51 = vld [vmem:[%s2013_s1 + $0x2c8] sm:$0xff]  ;;  %v157_v54 = vld [vmem:[%s2013_s1 + $0x2c0] sm:$0xff]  ;;  %v140_v56 = vld [vmem:[%s2013_s1 + $0x238] sm:$0xff] }
  0x40   :  { %1172 = vmatprep.subr.mxu0 %v117_v28  ;;  %1291 = vmatprep.subr.mxu1 %v166_v30  ;;  %v142_v52 = vld [vmem:[%s2013_s1 + $0x248] sm:$0xff]  ;;  %v153_v61 = vld [vmem:[%s2013_s1 + $0x2a0] sm:$0xff]  ;;  %v152_v63 = vld [vmem:[%s2013_s1 + $0x298] sm:$0xff] }
  0x41   :  { %1173 = vmatpush3.msra.mxu0 %v101_v31  ;;  %1292 = vmatpush3.msra.mxu1 %v166_v30  ;;  %v61_v53 = vld [vmem:[#allocation2 + $0x5] sm:$0xff]  ;;  %v136_v0 = vld [vmem:[%s2013_s1 + $0x218] sm:$0xff]  ;;  %v151_v1 = vld [vmem:[%s2013_s1 + $0x290] sm:$0xff] }
  0x42   :  { %338 = vmatmul.mubr.f32.vlgmr.msra.gmra.mxu0 %v49_v32  ;;  %1186 = vmatprep.subr.mxu0 %v164_v33  ;;  %v154_v59 = vld [vmem:[%s2013_s1 + $0x2a8] sm:$0xff]  ;;  %v137_v62 = vld [vmem:[%s2013_s1 + $0x220] sm:$0xff]  ;;  %v135_v2 = vld [vmem:[%s2013_s1 + $0x210] sm:$0xff] }
  0x43   :  { %1187 = vmatpush3.msra.mxu0 %v148_v34  ;;  %342 = vmatprep.mubr.f32.mxu0 %v1515_v22  ;;  %v145_v22 = vld [vmem:[%s2013_s1 + $0x260] sm:$0xff]  ;;  %v138_v60 = vld [vmem:[%s2013_s1 + $0x228] sm:$0xff]  ;;  %v557_v15 = vld [vmem:[%s2015_s3 + $0x18] sm:$0xff] }
  0x44   :  { %1188 = vmatprep.subr.mxu0 %v163_v35  ;;  %1293 = vmatprep.subr.mxu1 %v165_v36  ;;  %v150_v3 = vld [vmem:[%s2013_s1 + $0x288] sm:$0xff]  ;;  %v149_v6 = vld [vmem:[%s2013_s1 + $0x280] sm:$0xff]  ;;  %v556_v16 = vld [vmem:[%s2015_s3 + $0x10] sm:$0xff] }
  0x45   :  { %1189 = vmatpush3.msra.mxu0 %v147_v37  ;;  %1294 = vmatpush3.msra.mxu1 %v165_v36  ;;  %v134_v5 = vld [vmem:[%s2013_s1 + $0x208] sm:$0xff]  ;;  %v133_v7 = vld [vmem:[%s2013_s1 + $0x200] sm:$0xff] }
  0x46   :  { %343 = vmatmul.mubr.f32.gmra.mxu0 %v50_v38  ;;  %1190 = vmatprep.subr.mxu0 %v162_v39  ;;  %v57_v8 = vld [vmem:[#allocation2 + $0x4] sm:$0xff]  ;;  %v62_v9 = vld [vmem:[#allocation2 + $0xd] sm:$0xff]  ;;  %v59_v12 = vld [vmem:[#allocation2 + $0x1c] sm:$0xff] }
  0x47   :  { %1191 = vmatpush3.msra.mxu0 %v146_v40  ;;  %347 = vmatprep.mubr.f32.mxu0 %v1527_v26  ;;  %v143_v26 = vld [vmem:[%s2013_s1 + $0x250] sm:$0xff]  ;;  %v63_v11 = vld [vmem:[#allocation2 + $0x1d] sm:$0xff]  ;;  %v64_v13 = vld [vmem:[#allocation2 + $0x25] sm:$0xff] }
  0x48   :  { %1192 = vmatprep.subr.mxu0 %v161_v41  ;;  %1295 = vmatprep.mubr.f32.mxu1 %v65_v42  ;;  %v58_v10 = vld [vmem:[#allocation2 + $0xc] sm:$0xff]  ;;  %v60_v14 = vld [vmem:[#allocation2 + $0x24] sm:$0xff]  ;;  %v655_v19 = vld [vmem:[%s2016_s4] sm:$0x3] }
  0x49   :  { %1193 = vmatpush3.msra.mxu0 %v145_v22  ;;  %1296 = vmatmul.mubr.f32.vlgmr.msra.gmra.mxu1 %v66_v43  ;;  %v555_v17 = vld [vmem:[%s2015_s3 + $0x8] sm:$0xff]  ;;  %v554_v18 = vld [vmem:[%s2015_s3] sm:$0xff] }
  0x4a   :  { %348 = vmatmul.mubr.f32.gmra.mxu0 %v51_v44  ;;  %1194 = vmatprep.subr.mxu0 %v160_v45  ;;  %v1079_v39 = vld [vmem:[%s2014_s2] ss:$0 sm:$0xff] }
  0x4b   :  { %1195 = vmatpush3.msra.mxu0 %v144_v46  ;;  %352 = vmatprep.mubr.f32.mxu0 %v1539_v29  ;;  %v141_v29 = vld [vmem:[%s2013_s1 + $0x240] sm:$0xff] }
  0x4c   :  { %1196 = vmatprep.subr.mxu0 %v159_v47  ;;  %1298 = vmatprep.mubr.f32.mxu1 %v67_v48 }
  0x4d   :  { %1197 = vmatpush3.msra.mxu0 %v143_v26  ;;  %1299 = vmatmul.mubr.f32.gmra.mxu1 %v68_v49 }
  0x4e   :  { %353 = vmatmul.mubr.f32.gmra.mxu0 %v52_v50  ;;  %1198 = vmatprep.subr.mxu0 %v158_v51 }
  0x4f   :  { %1199 = vmatpush3.msra.mxu0 %v142_v52  ;;  %422 = vmatprep.mubr.f32.mxu0 %v61_v53 }
  0x50   :  { %1200 = vmatprep.subr.mxu0 %v157_v54  ;;  %1301 = vmatprep.subr.mxu1 %v557_v15 }
  0x51   :  { %1201 = vmatpush3.msra.mxu0 %v141_v29  ;;  %1302 = vmatpush3.msra.mxu1 %v557_v15 }
  0x52   :  { %1202 = vmatprep.subr.mxu0 %v156_v55  ;;  %1303 = vmatprep.subr.mxu1 %v556_v16 }
  0x53   :  { %1203 = vmatpush3.msra.mxu0 %v140_v56  ;;  %1304 = vmatpush3.msra.mxu1 %v556_v16 }
  0x54   :  { %1204 = vmatprep.subr.mxu0 %v155_v57  ;;  %1305 = vmatprep.subr.mxu1 %v555_v17 }
  0x55   :  { %1205 = vmatpush3.msra.mxu0 %v139_v58  ;;  %1306 = vmatpush3.msra.mxu1 %v555_v17 }
  0x56   :  { %1206 = vmatprep.subr.mxu0 %v154_v59  ;;  %1307 = vmatprep.subr.mxu1 %v554_v18 }
  0x57   :  { %1207 = vmatpush3.msra.mxu0 %v138_v60  ;;  %1308 = vmatpush3.msra.mxu1 %v554_v18 }
  0x58   :  { %1208 = vmatprep.subr.mxu0 %v153_v61  ;;  %950 = vmatprep.subr.mxu1 %v1393_v4 }
  0x59   :  { %1209 = vmatpush3.msra.mxu0 %v137_v62 }
  0x5a   :  { %1210 = vmatprep.subr.mxu0 %v152_v63 }
  0x5b   :  { %1211 = vmatpush3.msra.mxu0 %v136_v0 }
  0x5c   :  { %1212 = vmatprep.subr.mxu0 %v151_v1 }
  0x5d   :  { %1213 = vmatpush3.msra.mxu0 %v135_v2 }
  0x5e   :  { %1214 = vmatprep.subr.mxu0 %v150_v3 }
  0x5f   :  { %1215 = vmatpush3.msra.mxu0 %v134_v5 }
  0x60   :  { %1216 = vmatprep.subr.mxu0 %v149_v6 }
  0x61   :  { %1217 = vmatpush3.msra.mxu0 %v133_v7 }
  0x62   :  { %423 = vmatmul.mubr.f32.vlgmr.msra.gmra.mxu0 %v57_v8  ;;  %1315 = vmatprep.subr.msk.mxu0 %vm669_vm1, %v655_v19 }
  0x63   :  { %427 = vmatprep.mubr.f32.mxu0 %v62_v9  ;;  %1316 = vmatpush3.msk.msra.mxu0 %vm669_vm1, %v655_v19 }
  0x66   :  { %428 = vmatmul.mubr.f32.gmra.mxu0 %v58_v10 }
  0x67   :  { %432 = vmatprep.mubr.f32.mxu0 %v63_v11 }
  0x6a   :  { %433 = vmatmul.mubr.f32.gmra.mxu0 %v59_v12 }
  0x6b   :  { %437 = vmatprep.mubr.f32.mxu0 %v64_v13 }
  0x6e   :  { %438 = vmatmul.mubr.f32.gmra.mxu0 %v60_v14 }
  0xe2   :  { %v1130_v20 = vpop.f32.mrf.mxu0 }
  0xe4   :  { %v1131_v21 = vpop.f32.mrf.mxu0 }
  0xe5   :  { %v1132_v38 = vadd.f32 %v1131_v21, %v1130_v20 }
  0xe6   :  { %v1133_v23 = vpop.f32.mrf.mxu0 }
  0xe7   :  { %v255_v43 = vadd.f32 %v1132_v38, %v1079_v39  ;;  %v911_v38 = vld [vmem:[%s2017_s5 + $0x40] sm:$0xff] }
  0xe8   :  { %v1134_v24 = vpop.f32.mrf.mxu0 }
  0xe9   :  { %v1135_v44 = vadd.f32 %v1134_v24, %v1133_v23 }
  0xea   :  { %v1136_v25 = vpop.f32.mrf.mxu0 }
  0xeb   :  { %v260_v50 = vadd.f32 %v1135_v44, %v1079_v39  ;;  %v904_v44 = vld [vmem:[%s2017_s5 + $0x8] sm:$0xff] }
  0xec   :  { %v1137_v27 = vpop.f32.mrf.mxu0 }
  0xed   :  { %v1138_v51 = vadd.f32 %v1137_v27, %v1136_v25 }
  0xee   :  { %v1139_v28 = vpop.f32.mrf.mxu0 }
  0xef   :  { %v265_v60 = vadd.f32 %v1138_v51, %v1079_v39 }
  0xf0   :  { %v1140_v30 = vpop.f32.mrf.mxu0 }
  0xf1   :  { %v1141_v57 = vadd.f32 %v1140_v30, %v1139_v28 }
  0xf3   :  { %v270_v5 = vadd.f32 %v1141_v57, %v1079_v39  ;;  %v910_v39 = vld [vmem:[%s2017_s5 + $0x38] sm:$0xff] }
 0x102   :  { %v1174_v31 = vpop.f32.mrf.mxu0 }
 0x104   :  { %v1175_v32 = vpop.f32.mrf.mxu0 }
 0x105   :  { %v1176_v41 = vadd.f32 %v1175_v32, %v1174_v31  ;;  %v918_v31 = vld [vmem:[%s2017_s5 + $0x78] sm:$0xff]  ;;  %v917_v32 = vld [vmem:[%s2017_s5 + $0x70] sm:$0xff] }
 0x106   :  { %v1177_v33 = vpop.f32.mrf.mxu0 }
 0x107   :  { %v340_v46 = vadd.f32 %v1176_v41, %v255_v43  ;;  %v908_v41 = vld [vmem:[%s2017_s5 + $0x28] sm:$0xff]  ;;  %v905_v43 = vld [vmem:[%s2017_s5 + $0x10] sm:$0xff] }
 0x108   :  { %v1178_v34 = vpop.f32.mrf.mxu0 }
 0x109   :  { %v1297_v22 = vpop.f32.mrf.mxu1  ;;  %v1179_v47 = vadd.f32 %v1178_v34, %v1177_v33  ;;  %v916_v33 = vld [vmem:[%s2017_s5 + $0x68] sm:$0xff]  ;;  %v915_v34 = vld [vmem:[%s2017_s5 + $0x60] sm:$0xff] }
 0x10a   :  { %v1180_v35 = vpop.f32.mrf.mxu0 }
 0x10b   :  { %v509_v49 = vpop.f32.mrf.mxu1  ;;  %v345_v54 = vadd.f32 %v1179_v47, %v260_v50  ;;  %v929_v47 = vld [vmem:[%s2017_s5 + $0xd0] sm:$0xff] }
 0x10c   :  { %v1181_v36 = vpop.f32.mrf.mxu0 }
 0x10d   :  { %v1182_v29 = vadd.f32 %v1181_v36, %v1180_v35  ;;  %v1300_v59 = vpop.f32.mrf.mxu1  ;;  %v914_v35 = vld [vmem:[%s2017_s5 + $0x58] sm:$0xff]  ;;  %v913_v36 = vld [vmem:[%s2017_s5 + $0x50] sm:$0xff] }
 0x10e   :  { %v1183_v37 = vpop.f32.mrf.mxu0 }
 0x10f   :  { %v350_v1 = vadd.f32 %v1182_v29, %v265_v60  ;;  %v519_v7 = vpop.f32.mrf.mxu1 }
 0x110   :  { %v1184_v40 = vpop.f32.mrf.mxu0 }
 0x111   :  { %v1185_v63 = vadd.f32 %v1184_v40, %v1183_v37  ;;  %v912_v37 = vld [vmem:[%s2017_s5 + $0x48] sm:$0xff]  ;;  %v909_v40 = vld [vmem:[%s2017_s5 + $0x30] sm:$0xff] }
 0x113   :  { %v355_v10 = vadd.f32 %v1185_v63, %v270_v5  ;;  %v923_v5 = vld [vmem:[%s2017_s5 + $0xa0] sm:$0xff] }
 0x122   :  { %v1218_v42 = vpop.f32.mrf.mxu0 }
 0x124   :  { %v1219_v45 = vpop.f32.mrf.mxu0 }
 0x125   :  { %v1220_v48 = vadd.f32 %v1219_v45, %v1218_v42  ;;  %v907_v42 = vld [vmem:[%s2017_s5 + $0x20] sm:$0xff] }
 0x126   :  { %v1221_v26 = vpop.f32.mrf.mxu0  ;;  %v903_v45 = vld [vmem:[%s2017_s5] sm:$0xff] }
 0x127   :  { %v425_v52 = vadd.f32 %v1220_v48, %v340_v46  ;;  %v930_v46 = vld [vmem:[%s2017_s5 + $0xd8] sm:$0xff]  ;;  %v928_v48 = vld [vmem:[%s2017_s5 + $0xc8] sm:$0xff] }
 0x128   :  { %v1222_v53 = vpop.f32.mrf.mxu0 }
 0x129   :  { %v1223_v55 = vadd.f32 %v1222_v53, %v1221_v26  ;;  %v510_v56 = vadd.f32 %v509_v49, %v425_v52  ;;  %v927_v26 = vld [vmem:[%s2017_s5 + $0xc0] sm:$0xff] }
 0x12a   :  { %v1224_v58 = vpop.f32.mrf.mxu0 }
 0x12b   :  { %v430_v61 = vadd.f32 %v1223_v55, %v345_v54  ;;  %v528_v62 = vmax.f32 %v510_v56, 0.0 }
 0x12c   :  { %v1225_v0 = vpop.f32.mrf.mxu0 }
 0x12d   :  { %v515_v2 = vadd.f32 %v1297_v22, %v430_v61  ;;  %v1226_v3 = vadd.f32 %v1225_v0, %v1224_v58  ;;  %1309 = vmatprep.mubr.msk.f32.mxu1 %vm532_vm0, %v528_v62  ;;  %v533_v12 = vsel %vm532_vm0, %v528_v62, 0.0  ;;  %v906_v22 = vld [vmem:[%s2017_s5 + $0x18] sm:$0xff] }
 0x12e   :  { %v1227_v6 = vpop.f32.mrf.mxu0  ;;  %v926_v58 = vld [vmem:[%s2017_s5 + $0xb8] sm:$0xff] }
 0x12f   :  { %v529_v8 = vmax.f32 %v515_v2, 0.0  ;;  %v435_v9 = vadd.f32 %v1226_v3, %v350_v1  ;;  %v924_v3 = vld [vmem:[%s2017_s5 + $0xa8] sm:$0xff] }
 0x130   :  { %v1228_v11 = vpop.f32.mrf.mxu0 }
 0x131   :  { %v534_v13 = vsel %vm532_vm0, %v529_v8, 0.0  ;;  %v1229_v14 = vadd.f32 %v1228_v11, %v1227_v6  ;;  %v520_v15 = vadd.f32 %v519_v7, %v435_v9  ;;  %1310 = vmatmul.mubr.msk.f32.vlgmr.msra.gmra.mxu1 %vm532_vm0, %v529_v8  ;;  %v922_v7 = vld [vmem:[%s2017_s5 + $0x98] sm:$0xff]  ;;  %v921_v8 = vld [vmem:[%s2017_s5 + $0x90] sm:$0xff] }
 0x132   :  { %v1841_v16 = vadd.f32 %v534_v13, %v533_v12  ;;  %951 = vmatpush1.msra.mxu1 %v918_v31 }
 0x133   :  { %v440_v17 = vadd.f32 %v1229_v14, %v355_v10  ;;  %v530_v18 = vmax.f32 %v520_v15, 0.0  ;;  %952 = vmatprep.subr.mxu1 %v1393_v4  ;;  %v920_v15 = vld [vmem:[%s2017_s5 + $0x88] sm:$0xff] }
 0x134   :  { %953 = vmatpush1.msra.mxu1 %v917_v32  ;;  %v536_v49 = vrot.slane %v1841_v16, 4 }
 0x135   :  { %v525_v19 = vadd.f32 %v1300_v59, %v440_v17  ;;  %1312 = vmatprep.mubr.msk.f32.mxu1 %vm532_vm0, %v530_v18  ;;  %v542_v21 = vsel %vm532_vm0, %v530_v18, 0.0  ;;  %954 = vmatprep.subr.mxu1 %v1393_v4  ;;  %v925_v59 = vld [vmem:[%s2017_s5 + $0xb0] sm:$0xff] }
 0x136   :  { %955 = vmatpush1.msra.mxu1 %v916_v33  ;;  %v537_v50 = vadd.f32 %v536_v49, %v1841_v16  ;;  %v919_v16 = vld [vmem:[%s2017_s5 + $0x80] sm:$0xff]  ;;  %s1396_s5 = smov 96  }
 0x137   :  { %v531_v20 = vmax.f32 %v525_v19, 0.0  ;;  %956 = vmatprep.subr.mxu1 %v1393_v4 }
 0x138   :  { %957 = vmatpush1.msra.mxu1 %v915_v34  ;;  %v538_v52 = vrot.slane %v537_v50, 2 }
 0x139   :  { %v543_v23 = vsel %vm532_vm0, %v531_v20, 0.0  ;;  %1313 = vmatmul.mubr.msk.f32.gmra.mxu1 %vm532_vm0, %v531_v20  ;;  %958 = vmatprep.subr.mxu1 %v1393_v4 }
 0x13a   :  { %v1847_v24 = vadd.f32 %v543_v23, %v542_v21  ;;  %959 = vmatpush1.msra.mxu1 %v914_v35  ;;  %v539_v54 = vadd.f32 %v538_v52, %v537_v50 }
 0x13b   :  { %960 = vmatprep.subr.mxu1 %v1393_v4 }
 0x13c   :  { %961 = vmatpush1.msra.mxu1 %v913_v36  ;;  %v545_v51 = vrot.slane %v1847_v24, 4  ;;  %v540_v29 = vrot.slane %v539_v54, 1 }
 0x13d   :  { %962 = vmatprep.subr.mxu1 %v1393_v4 }
 0x13e   :  { %963 = vmatpush1.msra.mxu1 %v912_v37  ;;  %v546_v53 = vadd.f32 %v545_v51, %v1847_v24  ;;  %v541_v56 = vadd.f32 %v540_v29, %v539_v54 }
 0x13f   :  { %964 = vmatprep.subr.mxu1 %v1393_v4 }
 0x140   :  { %965 = vmatpush1.msra.mxu1 %v911_v38  ;;  %v547_v55 = vrot.slane %v546_v53, 2  ;;  %v552_v60 = vmul.f32 0.0625, %v541_v56 }
 0x141   :  { %966 = vmatprep.subr.mxu1 %v1393_v4 }
 0x142   :  { %967 = vmatpush1.msra.mxu1 %v910_v39  ;;  %v548_v57 = vadd.f32 %v547_v55, %v546_v53 }
 0x143   :  { %968 = vmatprep.subr.mxu1 %v1393_v4 }
 0x144   :  { %969 = vmatpush1.msra.mxu1 %v909_v40  ;;  %v549_v61 = vrot.slane %v548_v57, 1 }
 0x145   :  { %970 = vmatprep.subr.mxu1 %v1393_v4 }
 0x146   :  { %971 = vmatpush1.msra.mxu1 %v908_v41  ;;  %v550_v2 = vadd.f32 %v549_v61, %v548_v57 }
 0x147   :  { %972 = vmatprep.subr.mxu1 %v1393_v4 }
 0x148   :  { %973 = vmatpush1.msra.mxu1 %v907_v42  ;;  %v553_v6 = vmul.f32 0.0625, %v550_v2 }
 0x149   :  { %974 = vmatprep.subr.mxu1 %v1393_v4 }
 0x14a   :  { %975 = vmatpush1.msra.mxu1 %v906_v22 }
 0x14b   :  { %976 = vmatprep.subr.mxu1 %v1393_v4 }
 0x14c   :  { %977 = vmatpush1.msra.mxu1 %v905_v43 }
 0x14d   :  { %978 = vmatprep.subr.mxu1 %v1393_v4 }
 0x14e   :  { %979 = vmatpush1.msra.mxu1 %v904_v44 }
 0x14f   :  { %980 = vmatprep.subr.mxu1 %v1393_v4 }
 0x150   :  { %981 = vmatpush1.msra.mxu1 %v903_v45 }
 0x151   :  { %990 = vmatprep.subr.mxu1 %v1393_v4 }
 0x152   :  { %991 = vmatpush2.msra.mxu1 %v930_v46 }
 0x153   :  { %992 = vmatprep.subr.mxu1 %v1393_v4 }
 0x154   :  { %993 = vmatpush2.msra.mxu1 %v929_v47 }
 0x155   :  { %994 = vmatprep.subr.mxu1 %v1393_v4 }
 0x156   :  { %995 = vmatpush2.msra.mxu1 %v928_v48 }
 0x157   :  { %996 = vmatprep.subr.mxu1 %v1393_v4 }
 0x158   :  { %997 = vmatpush2.msra.mxu1 %v927_v26 }
 0x159   :  { %998 = vmatprep.subr.mxu1 %v1393_v4 }
 0x15a   :  { %999 = vmatpush2.msra.mxu1 %v926_v58 }
 0x15b   :  { %1000 = vmatprep.subr.mxu1 %v1393_v4 }
 0x15c   :  { %1001 = vmatpush2.msra.mxu1 %v925_v59 }
 0x15d   :  { %1002 = vmatprep.subr.mxu1 %v1393_v4 }
 0x15e   :  { %1003 = vmatpush2.msra.mxu1 %v924_v3 }
 0x15f   :  { %1004 = vmatprep.subr.mxu1 %v1393_v4 }
 0x160   :  { %1005 = vmatpush2.msra.mxu1 %v923_v5 }
 0x161   :  { %1006 = vmatprep.subr.mxu1 %v1393_v4 }
 0x162   :  { %1007 = vmatpush2.msra.mxu1 %v922_v7 }
 0x163   :  { %1008 = vmatprep.subr.mxu1 %v1393_v4 }
 0x164   :  { %1009 = vmatpush2.msra.mxu1 %v921_v8 }
 0x165   :  { %1010 = vmatprep.subr.mxu1 %v1393_v4 }
 0x166   :  { %1011 = vmatpush2.msra.mxu1 %v920_v15 }
 0x167   :  { %1012 = vmatprep.subr.mxu1 %v1393_v4 }
 0x168   :  { %1013 = vmatpush2.msra.mxu1 %v919_v16 }
 0x1f1   :  { %v1311_v25 = vpop.f32.mrf.mxu1 }
 0x1f3   :  { %v636_v27 = vpop.f32.mrf.mxu1 }
 0x1f4   :  { %1317 = vmatprep.mubr.msk.f32.mxu0 %vm656_vm2, %v636_v27 }
 0x1f5   :  { %1318 = vmatmul.mubr.msk.f32.vlgmr.msra.gmra.mxu0 %vm656_vm2, %v1311_v25 }
 0x1f9   :  { %v1314_v28 = vpop.f32.mrf.mxu1 }
 0x1fb   :  { %v646_v30 = vpop.f32.mrf.mxu1 }
 0x1fc   :  { %1320 = vmatprep.mubr.msk.f32.mxu0 %vm656_vm2, %v646_v30 }
 0x1fd   :  { %1321 = vmatmul.mubr.msk.f32.gmra.mxu0 %vm656_vm2, %v1314_v28 }
 0x2b5   :  { %v1319_v62 = vpop.f32.mrf.mxu0 }
 0x2b6   :  { %v759_v63 = vmul.f32 %v1319_v62, %v552_v60 }
 0x2b7   :  { %v739_v0 = vpop.f32.mrf.mxu0 }
 0x2b8   :  { %770 = vst.msk [vmem:[#allocation3 + $0xb] sm:$0xff] %vm532_vm0, %v759_v63  ;;  %v758_v1 = vmul.f32 %v739_v0, %v552_v60 }
 0x2ba   :  { %769 = vst.msk [vmem:[#allocation3 + $0x3] sm:$0xff] %vm532_vm0, %v758_v1 }
 0x2bd   :  { %v1322_v9 = vpop.f32.mrf.mxu0 }
 0x2be   :  { %v761_v10 = vmul.f32 %v1322_v9, %v553_v6 }
 0x2bf   :  { %v749_v11 = vpop.f32.mrf.mxu0  ;;  %v798_v12 = vld [vmem:[#allocation3 + $0xe] sm:$0xff] }
 0x2c0   :  { %v794_v13 = vld [vmem:[#allocation3 + $0xd] sm:$0xff]  ;;  %772 = vst.msk [vmem:[#allocation3 + $0x23] sm:$0xff] %vm532_vm0, %v761_v10  ;;  %v760_v14 = vmul.f32 %v749_v11, %v553_v6  ;;  %871 = vrot.lane.b32.xlu0 %v798_v12, %s1394_s25 }
 0x2c1   :  { %855 = vrot.lane.b32.xlu1 %v794_v13, %s1395_s26  ;;  %v781_v17 = vld [vmem:[#allocation3 + $0x2] sm:$0xff]  ;;  %v782_v18 = vld [vmem:[#allocation3 + $0xa] sm:$0xff] }
 0x2c2   :  { %v777_v19 = vld [vmem:[#allocation3 + $0x1] sm:$0xff]  ;;  %771 = vst.msk [vmem:[#allocation3 + $0x1b] sm:$0xff] %vm532_vm0, %v760_v14  ;;  %v1335_v20 = vpack.i.bf16 %v782_v18, %v781_v17  ;;  %v778_v21 = vld [vmem:[#allocation3 + $0x9] sm:$0xff] }
 0x2c3   :  { %v1330_v23 = vpack.i.bf16 %v778_v21, %v777_v19  ;;  %v797_v24 = vld [vmem:[#allocation3 + $0x6] sm:$0xff] }
 0x2c4   :  { %v793_v25 = vld [vmem:[#allocation3 + $0x5] sm:$0xff] }
 0x2c5   :  { %1336 = vrot.lane.b32.xlu1 %v1335_v20, %s1394_s25  ;;  %1331 = vrot.lane.b32.xlu0 %v1330_v23, %s1395_s26  ;;  %v785_v27 = vld [vmem:[#allocation3 + $0x3] sm:$0xff]  ;;  %v786_v32 = vld [vmem:[#allocation3 + $0xb] sm:$0xff] }
 0x2c6   :  { %v1340_v33 = vpack.i.bf16 %v786_v32, %v785_v27  ;;  %v789_v47 = vld [vmem:[#allocation3 + $0x4] sm:$0xff]  ;;  %v790_v29 = vld [vmem:[#allocation3 + $0xc] sm:$0xff] }
 0x2c7   :  { %v800_v39 = vld [vmem:[#allocation3 + $0x26] sm:$0xff]  ;;  %v1089_v32 = vld [vmem:[%s2018_s6] ss:$0 sm:$0xff]  ;;  %s1397_s6 = smov [#allocation4]  }
 0x2c8   :  { %v796_v40 = vld [vmem:[#allocation3 + $0x25] sm:$0xff]  ;;  %s1068_s30 = sshll.u32 %s1397_s6, 4  ;;  %s1069_s30 = int_to_ptr.vmem [resolvable:$true] %s1068_s30 }
 0x2c9   :  { %869 = vrot.lane.b32.xlu1 %v797_v24, %s1394_s25  ;;  %853 = vrot.lane.b32.xlu0 %v793_v25, %s1395_s26  ;;  %v779_v28 = vld [vmem:[#allocation3 + $0x19] sm:$0xff]  ;;  %v780_v30 = vld [vmem:[#allocation3 + $0x21] sm:$0xff]  ;;  %s1371_s8 = scalar_lea.vmem %s1069_s30, 512  ;;  %p1376_p1 = scmp.lt.s32.totalorder %s1069_s30, %s1069_s30 }
 0x2ca   :  { %v1345_v31 = vpack.i.bf16 %v780_v30, %v779_v28  ;;  %v783_v34 = vld [vmem:[#allocation3 + $0x1a] sm:$0xff]  ;;  %v784_v35 = vld [vmem:[#allocation3 + $0x22] sm:$0xff]  ;;  %p1372_p0 = scmp.ne.s32.totalorder %s1069_s30, %s1371_s8  ;;  %p1377_p2 = scmp.lt.s32.totalorder %s1371_s8, %s1371_s8 }
 0x2cb   :  { %v1350_v4 = vpack.i.bf16 %v784_v35, %v783_v34  ;;  %v795_v36 = vld [vmem:[#allocation3 + $0x1d] sm:$0xff]  ;;  %v774_v60 = vld [vmem:[#allocation3 + $0x8] sm:$0xff] }
 0x2cc   :  { %v787_v37 = vld [vmem:[#allocation3 + $0x1b] sm:$0xff]  ;;  %v788_v41 = vld [vmem:[#allocation3 + $0x23] sm:$0xff]  ;;  %p1378_p3 = por %p1377_p2, %p1376_p1 }
 0x2cd   :  { %1346 = vrot.lane.b32.xlu1 %v1345_v31, %s1395_s26  ;;  %1341 = vrot.lane.b32.xlu0 %v1340_v33, %s1396_s5  ;;  %v799_v38 = vld [vmem:[#allocation3 + $0x1e] sm:$0xff] }
 0x2ce   :  { %v773_v50 = vld [vmem:[#allocation3] sm:$0xff]  ;;  %v775_v7 = vld [vmem:[#allocation3 + $0x18] sm:$0xff]  ;;  %p1379_p4 = pnand %p1378_p3, %p1372_p0 }
 0x2cf   :  { %v791_v8 = vld [vmem:[#allocation3 + $0x1c] sm:$0xff]  ;;  %v792_v20 = vld [vmem:[#allocation3 + $0x24] sm:$0xff] }
 0x2d0   :  { %v776_v25 = vld [vmem:[#allocation3 + $0x20] sm:$0xff] }
 0x2d1   :  { %1351 = vrot.lane.b32.xlu1 %v1350_v4, %s1394_s25  ;;  %857 = vrot.lane.b32.xlu0 %v795_v36, %s1395_s26 }
 0x2d5   :  { %841 = vrot.lane.b32.xlu1 %v787_v37, %s1396_s5  ;;  %873 = vrot.lane.b32.xlu0 %v799_v38, %s1394_s25 }
 0x2d9   :  { %875 = vrot.lane.b32.xlu1 %v800_v39, %s1394_s25  ;;  %859 = vrot.lane.b32.xlu0 %v796_v40, %s1395_s26 }
 0x2dd   :  { %843 = vrot.lane.b32.xlu0 %v788_v41, %s1396_s5 }
 0x332   :  { %v872_v42 = vpop.permute.xlu0 %871 }
 0x333   :  { %v856_v22 = vpop.permute.xlu1 %855 }
 0x334   :  { %v896_v56 = vsel %vm532_vm0, %v790_v29, %v856_v22 }
 0x335   :  { %v900_v5 = vsel %vm885_vm5, %v896_v56, %v872_v42 }
 0x337   :  { %v1337_v43 = vpop.permute.xlu1 %1336  ;;  %v1332_v44 = vpop.permute.xlu0 %1331 }
 0x338   :  { %v1333_v45 = vunpack.i.l.bf16 %v1332_v44  ;;  %v1338_v49 = vunpack.i.l.bf16 %v1337_v43  ;;  %v1334_v52 = vunpack.i.h.bf16 %v1332_v44  ;;  %v1339_v58 = vunpack.i.h.bf16 %v1337_v43 }
 0x33a   :  { %v881_v53 = vsel %vm532_vm0, %v773_v50, %v1333_v45  ;;  %v882_v1 = vsel %vm532_vm0, %v774_v60, %v1334_v52 }
 0x33b   :  { %v870_v46 = vpop.permute.xlu1 %869  ;;  %v854_v48 = vpop.permute.xlu0 %853  ;;  %v886_v59 = vsel %vm885_vm5, %v881_v53, %v1338_v49  ;;  %v887_v6 = vsel %vm885_vm5, %v882_v1, %v1339_v58 }
 0x33c   :  { %v895_v26 = vsel %vm532_vm0, %v789_v47, %v854_v48 }
 0x33d   :  { %v899_v51 = vsel %vm885_vm5, %v895_v26, %v870_v46 }
 0x33e   :  { %1090 = vmatprep.mubr.msk.f32.mxu1 %vm890_vm4, %v899_v51 }
 0x33f   :  { %v1347_v54 = vpop.permute.xlu1 %1346  ;;  %v1342_v55 = vpop.permute.xlu0 %1341 }
 0x340   :  { %v1343_v57 = vunpack.i.l.bf16 %v1342_v55  ;;  %v1348_v61 = vunpack.i.l.bf16 %v1347_v54  ;;  %v1344_v62 = vunpack.i.h.bf16 %v1342_v55  ;;  %v1349_v16 = vunpack.i.h.bf16 %v1347_v54 }
 0x342   :  { %v891_v0 = vsel %vm890_vm4, %v886_v59, %v1343_v57  ;;  %v892_v10 = vsel %vm890_vm4, %v887_v6, %v1344_v62  ;;  %v883_v11 = vsel %vm532_vm0, %v775_v7, %v1348_v61  ;;  %v884_v27 = vsel %vm532_vm0, %v776_v25, %v1349_v16 }
 0x343   :  { %v1352_v63 = vpop.permute.xlu1 %1351  ;;  %v858_v3 = vpop.permute.xlu0 %857  ;;  %1015 = vmatmul.mubr.f32.vlgmr.msra.gmra.mxu1 %v891_v0 }
 0x344   :  { %v1353_v2 = vunpack.i.l.bf16 %v1352_v63  ;;  %1091 = vmatprep.mubr.msk.f32.mxu1 %vm890_vm4, %v900_v5  ;;  %v897_v12 = vsel %vm532_vm0, %v791_v8, %v858_v3  ;;  %v1354_v19 = vunpack.i.h.bf16 %v1352_v63 }
 0x346   :  { %v888_v14 = vsel %vm885_vm5, %v883_v11, %v1353_v2  ;;  %v889_v30 = vsel %vm885_vm5, %v884_v27, %v1354_v19 }
 0x347   :  { %v842_v9 = vpop.permute.xlu1 %841  ;;  %v874_v13 = vpop.permute.xlu0 %873  ;;  %1020 = vmatmul.mubr.f32.gmra.mxu1 %v892_v10 }
 0x348   :  { %v901_v15 = vsel %vm885_vm5, %v897_v12, %v874_v13  ;;  %v893_v18 = vsel %vm890_vm4, %v888_v14, %v842_v9 }
 0x349   :  { %1092 = vmatprep.mubr.msk.f32.mxu1 %vm890_vm4, %v901_v15 }
 0x34b   :  { %v876_v17 = vpop.permute.xlu1 %875  ;;  %v860_v21 = vpop.permute.xlu0 %859  ;;  %1025 = vmatmul.mubr.f32.gmra.mxu1 %v893_v18 }
 0x34c   :  { %v898_v23 = vsel %vm532_vm0, %v792_v20, %v860_v21 }
 0x34d   :  { %v902_v24 = vsel %vm885_vm5, %v898_v23, %v876_v17 }
 0x34e   :  { %1093 = vmatprep.mubr.msk.f32.mxu1 %vm890_vm4, %v902_v24 }
 0x34f   :  { %v844_v28 = vpop.permute.xlu0 %843 }
 0x350   :  { %v894_v31 = vsel %vm890_vm4, %v889_v30, %v844_v28 }
 0x351   :  { %1030 = vmatmul.mubr.f32.gmra.mxu1 %v894_v31 }
 0x403   :  { %v1016_v33 = vpop.f32.mrf.mxu1 }
 0x404   :  { %v1017_v34 = vadd.f32 %v1089_v32, %v1016_v33 }
 0x405   :  { %v1018_v35 = vpop.f32.mrf.mxu1 }
 0x406   :  { %v1094_v4 = vmul.f32 -1.442695, %v1017_v34 }
 0x407   :  { %v1021_v36 = vpop.f32.mrf.mxu1 }
 0x408   :  { %1355 = vpow2.f32 %v1094_v4  ;;  %v1022_v37 = vadd.f32 %v1089_v32, %v1021_v36 }
 0x409   :  { %v1023_v38 = vpop.f32.mrf.mxu1 }
 0x40a   :  { %v1095_v39 = vmul.f32 -1.442695, %v1022_v37 }
 0x40b   :  { %v1026_v40 = vpop.f32.mrf.mxu1 }
 0x40c   :  { %1357 = vpow2.f32 %v1095_v39  ;;  %v1027_v41 = vadd.f32 %v1089_v32, %v1026_v40 }
 0x40d   :  { %v1028_v42 = vpop.f32.mrf.mxu1 }
 0x40e   :  { %v1096_v22 = vmul.f32 -1.442695, %v1027_v41 }
 0x410   :  { %1359 = vpow2.f32 %v1096_v22 }
 0x411   :  { %v1031_v43 = vpop.f32.mrf.mxu1 }
 0x412   :  { %v1032_v44 = vadd.f32 %v1089_v32, %v1031_v43 }
 0x413   :  { %v1033_v45 = vpop.f32.mrf.mxu1 }
 0x414   :  { %v1097_v46 = vmul.f32 -1.442695, %v1032_v44 }
 0x415   :  { %v1356_v47 = vpop.eup %1355 }
 0x416   :  { %v1047_v48 = vadd.f32 1.0, %v1356_v47  ;;  %1361 = vpow2.f32 %v1097_v46 }
 0x418   :  { %1363 = vrcp.f32 %v1047_v48 }
 0x419   :  { %v1358_v26 = vpop.eup %1357 }
 0x41a   :  { %v1048_v49 = vadd.f32 1.0, %v1358_v26 }
 0x41c   :  { %1365 = vrcp.f32 %v1048_v49 }
 0x41d   :  { %v1360_v50 = vpop.eup %1359 }
 0x41e   :  { %v1049_v51 = vadd.f32 1.0, %v1360_v50 }
 0x420   :  { %1367 = vrcp.f32 %v1049_v51 }
 0x423   :  { %v1362_v52 = vpop.eup %1361 }
 0x424   :  { %v1050_v53 = vadd.f32 1.0, %v1362_v52 }
 0x425   :  { %v1364_v54 = vpop.eup %1363 }
 0x426   :  { %1059 = vst [vmem:[#allocation4] sm:$0xff] %v1364_v54  ;;  %1369 = vrcp.f32 %v1050_v53 }
 0x429   :  { %v1366_v29 = vpop.eup %1365 }
 0x42a   :  { %1060 = vst [vmem:[#allocation4 + $0x8] sm:$0xff] %v1366_v29 }
 0x42d   :  { %v1368_v55 = vpop.eup %1367 }
 0x42e   :  { %1061 = vst [vmem:[#allocation4 + $0x10] sm:$0xff] %v1368_v55 }
 0x433   :  { %v1370_v56 = vpop.eup %1369 }
 0x434   :  { %1062 = vst [vmem:[#allocation4 + $0x18] sm:$0xff] %v1370_v56 }
 0x435   :  { %1382 = shalt.err (!%p1379_p4)
}
 0x436   :  { %s1398_s9 = smov 128   ;;  %s1399_s10 = smov 8  }
 0x437   :  { %1074 = dma.vmem_to_hbm [thread:$0]  %s1069_s30, 512, %s2019_s7, [#allocation5], %s1398_s9, %s1398_s9, %s1399_s10  }
 0x438   :  { %1391 = dma.done.wait [#allocation5], 512  }
 0x439   :  { %1392 = vsyncadd [#allocation5], 4294966784 }
 0x43a   :  { %1078 = vsyncpa [#allocation5], 1 }

</bundles_post_ra>
